<compile_context>
chip_gen: v6e
topology: v6e:2x2x1
jax: 0.10.0
libtpu: 0.0.40
codegen_flags: <defaults>
</compile_context>

<pallas_src>
import functools

import jax
import jax.numpy as jnp
from jax.experimental import pallas as pl
from jax.experimental.pallas import tpu as pltpu


def _round_up(n, m):
    return ((n + m - 1) // m) * m


# ------------------------------------------------------------------ kernels --

def _first_layer(x_ref, wcat_ref, bcat_ref):
    """Fused first layer for both sub-nets: one MXU pass over [W1a | W2a]."""
    cdt = wcat_ref.dtype
    x = x_ref[...].astype(cdt)                       # f32 HBM tile -> bf16 vregs
    h = jnp.dot(x, wcat_ref[...], preferred_element_type=jnp.float32)
    h = jnp.maximum(h + bcat_ref[...], 0.0)          # f32 bias + ReLU on the VPU
    return h.astype(cdt)                             # back to bf16 for the MXU


def _mix_and_store(x1, x2, tau, out_ref):
    # Padded class lanes of x1 carry a baked-in -1e30 bias, so a plain row max
    # over all lanes is already correct (no iota/mask needed).
    m = jnp.max(x1, axis=1, keepdims=True)           # (TB, 1) -> XLU
    cond = (m > tau).astype(jnp.float32)             # (TB, 1)
    # Exact CombNet semantics: x1*cond + x2*(1-cond)  (NaN-propagating form).
    out_ref[...] = (x1 * cond + x2 * (1.0 - cond)).astype(out_ref.dtype)


def _combnet_kernel_fused(tau_ref, x_ref, wcat_ref, bcat_ref,
                          wdiag_ref, bdiag_ref, out_ref, *, c_pad):
    """Second layer as one block-diagonal (2H, 2C) MXU pass (v6e / v7x)."""
    tau = tau_ref[0, 0]
    h = _first_layer(x_ref, wcat_ref, bcat_ref)                     # (TB, 2H)
    x12 = jnp.dot(h, wdiag_ref[...],
                  preferred_element_type=jnp.float32) + bdiag_ref[...]
    _mix_and_store(x12[:, :c_pad], x12[:, c_pad:], tau, out_ref)


def _combnet_kernel_split(tau_ref, x_ref, wcat_ref, bcat_ref,
                          w1b_ref, b1b_ref, w2b_ref, b2b_ref, out_ref, *, h_pad):
    """Second layer as two 128-wide MXU passes (v5e's 4x128^2 MXU)."""
    tau = tau_ref[0, 0]
    h = _first_layer(x_ref, wcat_ref, bcat_ref)                     # (TB, 2H)
    h1 = h[:, :h_pad]                                               # net_orig
    h2 = h[:, h_pad:]                                               # net_fake
    x1 = jnp.dot(h1, w1b_ref[...], preferred_element_type=jnp.float32) + b1b_ref[...]
    x2 = jnp.dot(h2, w2b_ref[...], preferred_element_type=jnp.float32) + b2b_ref[...]
    _mix_and_store(x1, x2, tau, out_ref)


# ------------------------------------------------------------ param prep -----

def _default_fuse_second_layer():
    # v6e / v7x: 2x256^2 MXU -> fuse the two 128-wide second-layer matmuls into
    # one 256x256 block-diagonal pass.  v5e/v4 (128-wide MXU tiles) keep two
    # separate passes: the block-diagonal would only add zero FLOPs there.
    try:
        kind = jax.devices()[0].device_kind.lower()
    except Exception:
        return True
    return not any(t in kind for t in ("v2", "v3", "v4", "v5"))


def prepare_combnet_params(params_orig, params_fake, *,
                           compute_dtype=jnp.bfloat16, fuse_second_layer=None):
    """Pad / cast / concat weights ONCE per parameter set (hoisted out of the
    per-call path).  Returns a dict consumed by combnet_apply()."""
    if fuse_second_layer is None:
        fuse_second_layer = _default_fuse_second_layer()

    D, H = params_orig["wa"].shape
    C = params_orig["wb"].shape[1]
    H_pad = _round_up(H, 128)
    C_pad = _round_up(C, 128)

    def pad2(a, rows, cols):
        return jnp.pad(a, ((0, rows - a.shape[0]), (0, cols - a.shape[1])))

    # Fused first layer: x @ [W1a | W2a].  K stays at the true D (x is never
    # padded along features); padded H lanes get zero weight/bias.
    wcat = jnp.concatenate(
        [pad2(params_orig["wa"], D, H_pad),
         pad2(params_fake["wa"], D, H_pad)], axis=1).astype(compute_dtype)
    bcat = jnp.concatenate(
        [pad2(params_orig["ba"].reshape(1, -1), 1, H_pad),
         pad2(params_fake["ba"].reshape(1, -1), 1, H_pad)], axis=1
    ).astype(jnp.float32)

    w1b = pad2(params_orig["wb"], H_pad, C_pad).astype(compute_dtype)
    w2b = pad2(params_fake["wb"], H_pad, C_pad).astype(compute_dtype)

    # Bake the class-lane mask into net_orig's bias: padded lanes of x1 become
    # a large negative *finite* value so the in-kernel row max is correct with
    # no iota/where, and -1e30 * 0 stays finite (unlike -inf).
    b1b = jnp.full((1, C_pad), -1e30, jnp.float32)
    b1b = b1b.at[:, :C].set(params_orig["bb"].reshape(1, -1).astype(jnp.float32))
    b2b = pad2(params_fake["bb"].reshape(1, -1), 1, C_pad).astype(jnp.float32)

    prep = dict(D=D, H_pad=H_pad, C=C, C_pad=C_pad,
                fuse_second_layer=bool(fuse_second_layer),
                wcat=wcat, bcat=bcat)
    if fuse_second_layer:
        wdiag = jnp.zeros((2 * H_pad, 2 * C_pad), compute_dtype)
        wdiag = wdiag.at[:H_pad, :C_pad].set(w1b)
        wdiag = wdiag.at[H_pad:, C_pad:].set(w2b)
        prep["wdiag"] = wdiag
        prep["bdiag"] = jnp.concatenate([b1b, b2b], axis=1)
    else:
        prep.update(w1b=w1b, b1b=b1b, w2b=w2b, b2b=b2b)
    return prep


# ------------------------------------------------------------------ forward --

def _pick_batch_tile(B, block_b):
    # Multiple of 16 sublanes (bf16 packing), capped at block_b.
    tb = min(block_b, _round_up(B, 16))
    # Keep >= 2 grid steps when the batch is big enough so v7x's two
    # TensorCores both get work under dimension_semantics=("parallel",).
    if B > 32 and _round_up(B, 16) <= tb:
        tb = _round_up(pl.cdiv(B, 2), 16)
    return tb


def combnet_apply(x, prep, tau=0.5, *, block_b=512, keep_padded=False):
    B, D = x.shape
    assert D == prep["D"], "feature dim mismatch with prepared params"
    H_pad, C, C_pad = prep["H_pad"], prep["C"], prep["C_pad"]

    TB = _pick_batch_tile(B, block_b)
    B_pad = _round_up(B, TB)
    if B_pad != B:
        # Rows-only pad in the original dtype (no full cast pass over x).
        x = jnp.pad(x, ((0, B_pad - B), (0, 0)))

    tau_arr = jnp.full((1, 1), tau, jnp.float32)
    grid = (B_pad // TB,)

    def resident(shape):
        # Constant block index -> fetched once, VMEM-resident across the grid.
        return pl.BlockSpec(shape, lambda i: (0, 0))

    common_specs = [
        pl.BlockSpec(memory_space=pltpu.MemorySpace.SMEM),   # tau scalar
        pl.BlockSpec((TB, D), lambda i: (i, 0)),             # x batch tile (f32)
        resident((D, 2 * H_pad)),                            # fused W1
        resident((1, 2 * H_pad)),                            # fused b1
    ]

    if prep["fuse_second_layer"]:
        kernel = functools.partial(_combnet_kernel_fused, c_pad=C_pad)
        in_specs = common_specs + [resident((2 * H_pad, 2 * C_pad)),
                                   resident((1, 2 * C_pad))]
        args = (tau_arr, x, prep["wcat"], prep["bcat"],
                prep["wdiag"], prep["bdiag"])
    else:
        kernel = functools.partial(_combnet_kernel_split, h_pad=H_pad)
        in_specs = common_specs + [resident((H_pad, C_pad)), resident((1, C_pad)),
                                   resident((H_pad, C_pad)), resident((1, C_pad))]
        args = (tau_arr, x, prep["wcat"], prep["bcat"],
                prep["w1b"], prep["b1b"], prep["w2b"], prep["b2b"])

    out = pl.pallas_call(
        kernel,
        out_shape=jax.ShapeDtypeStruct((B_pad, C_pad), jnp.float32),
        grid=grid,
        in_specs=in_specs,
        out_specs=pl.BlockSpec((TB, C_pad), lambda i: (i, 0)),
        compiler_params=pltpu.CompilerParams(
            dimension_semantics=("parallel",)),               # megacore split
    )(*args)

    if keep_padded:
        return out                         # (B_pad, C_pad), valid in [:B, :C]
    return out[:B, :C]


def combnet_forward(x, params_orig, params_fake, tau=0.5, **kwargs):
    """Convenience one-shot entry point (prep + apply). For repeated calls with
    the same weights, call prepare_combnet_params() once and combnet_apply()."""
    prep = prepare_combnet_params(params_orig, params_fake)
    return combnet_apply(x, prep, tau, **kwargs)


# ---------------------------------------------------------------- reference --

def init_mlp_params(key, d_in, d_hidden, d_out):
    k1, k2, k3, k4 = jax.random.split(key, 4)
    return {
        "wa": jax.random.normal(k1, (d_in, d_hidden), jnp.float32) * 0.1,
        "ba": jax.random.normal(k2, (1, d_hidden), jnp.float32) * 0.1,
        "wb": jax.random.normal(k3, (d_hidden, d_out), jnp.float32) * 0.1,
        "bb": jax.random.normal(k4, (1, d_out), jnp.float32) * 0.1,
    }


def reference_forward(x, p_orig, p_fake, tau=0.5, compute_dtype=jnp.bfloat16):
    """Pure-JAX reference mirroring the kernel's bf16-matmul / f32-accumulate path."""
    def mlp(p):
        h = jnp.dot(x.astype(compute_dtype), p["wa"].astype(compute_dtype),
                    preferred_element_type=jnp.float32) + p["ba"]
        h = jnp.maximum(h, 0.0)
        return jnp.dot(h.astype(compute_dtype), p["wb"].astype(compute_dtype),
                       preferred_element_type=jnp.float32) + p["bb"]
    x1, x2 = mlp(p_orig), mlp(p_fake)
    cond = (jnp.max(x1, axis=1) > tau)[:, None].astype(jnp.float32)
    return x1 * cond + x2 * (1.0 - cond)


if __name__ == "__main__":
    B, D, H, C = 8, 32, 64, 16
    tau = 0.5

    key = jax.random.PRNGKey(0)
    kx, k_orig, k_fake = jax.random.split(key, 3)

    x = jax.random.normal(kx, (B, D), jnp.float32)
    params_orig = init_mlp_params(k_orig, D, H, C)
    params_fake = init_mlp_params(k_fake, D, H, C)

    ref = reference_forward(x, params_orig, params_fake, tau)

    # Exercise both second-layer strategies (block-diag fused for v6e/v7x,
    # split 128-wide passes for v5e); both must match the reference.
    for fuse in (True, False):
        prep = prepare_combnet_params(params_orig, params_fake,
                                      fuse_second_layer=fuse)   # hoisted once
        out = combnet_apply(x, prep, tau)
        out = jax.block_until_ready(out)
        assert out.shape == (B, C)
        assert jnp.allclose(out, ref, atol=1e-3, rtol=1e-3), (
            f"fuse={fuse}: max abs err = {jnp.max(jnp.abs(out - ref))}")

    print("KERNEL_OK")
</pallas_src>

<mosaic_0001>
module attributes {stable_mosaic.version = 11 : i64} {
  func.func @_combnet_kernel_fused(%arg0: i32, %arg1: memref<1x1xf32, #tpu.memory_space<smem>>, %arg2: memref<16x32xf32, #tpu.memory_space<vmem>>, %arg3: memref<32x256xbf16, #tpu.memory_space<vmem>>, %arg4: memref<1x256xf32, #tpu.memory_space<vmem>>, %arg5: memref<256x256xbf16, #tpu.memory_space<vmem>>, %arg6: memref<1x256xf32, #tpu.memory_space<vmem>>, %arg7: memref<16x128xf32, #tpu.memory_space<vmem>>) attributes {dimension_semantics = [#tpu.dimension_semantics<parallel>], iteration_bounds = array<i64: 1>, scalar_prefetch = 0 : i64, scratch_operands = 0 : i64, tpu.core_type = #tpu.core_type<tc>, window_params = [{transform_indices = @transform_0, window_bounds = array<i64: 1, 1>}, {transform_indices = @transform_1, window_bounds = array<i64: 16, 32>}, {pipeline_mode = #tpu.pipeline_mode<synchronous>, transform_indices = @transform_2, window_bounds = array<i64: 32, 256>}, {pipeline_mode = #tpu.pipeline_mode<synchronous>, transform_indices = @transform_3, window_bounds = array<i64: 1, 256>}, {pipeline_mode = #tpu.pipeline_mode<synchronous>, transform_indices = @transform_4, window_bounds = array<i64: 256, 256>}, {pipeline_mode = #tpu.pipeline_mode<synchronous>, transform_indices = @transform_5, window_bounds = array<i64: 1, 256>}, {transform_indices = @transform_6, window_bounds = array<i64: 16, 128>}]} {
    %c0 = arith.constant 0 : index
    %c0_0 = arith.constant 0 : index
    %0 = memref.load %arg1[%c0, %c0_0] : memref<1x1xf32, #tpu.memory_space<smem>>
    %c0_1 = arith.constant 0 : index
    %c0_2 = arith.constant 0 : index
    %1 = vector.load %arg2[%c0_1, %c0_2] : memref<16x32xf32, #tpu.memory_space<vmem>>, vector<16x32xf32>
    %2 = arith.truncf %1 : vector<16x32xf32> to vector<16x32xbf16>
    %c0_3 = arith.constant 0 : index
    %c0_4 = arith.constant 0 : index
    %3 = vector.load %arg3[%c0_3, %c0_4] : memref<32x256xbf16, #tpu.memory_space<vmem>>, vector<32x256xbf16>
    %cst = arith.constant dense<0.000000e+00> : vector<16x256xf32>
    %4 = tpu.matmul %2, %3, %cst {dimension_numbers = #tpu.dot_dimension_numbers<[1], [0], [0], [1], [0, 0, 1, 1], [], []>} : vector<16x32xbf16>, vector<32x256xbf16>, vector<16x256xf32> -> vector<16x256xf32>
    %c0_5 = arith.constant 0 : index
    %c0_6 = arith.constant 0 : index
    %5 = vector.load %arg4[%c0_5, %c0_6] : memref<1x256xf32, #tpu.memory_space<vmem>>, vector<1x256xf32>
    %6 = vector.broadcast %5 : vector<1x256xf32> to vector<16x256xf32>
    %7 = arith.addf %4, %6 : vector<16x256xf32>
    %cst_7 = arith.constant 0.000000e+00 : f32
    %8 = vector.broadcast %cst_7 : f32 to vector<16x256xf32>
    %9 = arith.maximumf %7, %8 : vector<16x256xf32>
    %10 = arith.truncf %9 : vector<16x256xf32> to vector<16x256xbf16>
    %c0_8 = arith.constant 0 : index
    %c0_9 = arith.constant 0 : index
    %11 = vector.load %arg5[%c0_8, %c0_9] : memref<256x256xbf16, #tpu.memory_space<vmem>>, vector<256x256xbf16>
    %cst_10 = arith.constant dense<0.000000e+00> : vector<16x256xf32>
    %12 = tpu.matmul %10, %11, %cst_10 {dimension_numbers = #tpu.dot_dimension_numbers<[1], [0], [0], [1], [0, 0, 1, 1], [], []>} : vector<16x256xbf16>, vector<256x256xbf16>, vector<16x256xf32> -> vector<16x256xf32>
    %c0_11 = arith.constant 0 : index
    %c0_12 = arith.constant 0 : index
    %13 = vector.load %arg6[%c0_11, %c0_12] : memref<1x256xf32, #tpu.memory_space<vmem>>, vector<1x256xf32>
    %14 = vector.broadcast %13 : vector<1x256xf32> to vector<16x256xf32>
    %15 = arith.addf %12, %14 : vector<16x256xf32>
    %16 = vector.extract_strided_slice %15 {offsets = [0, 0], sizes = [16, 128], strides = [1, 1]} : vector<16x256xf32> to vector<16x128xf32>
    %17 = vector.extract_strided_slice %15 {offsets = [0, 128], sizes = [16, 128], strides = [1, 1]} : vector<16x256xf32> to vector<16x128xf32>
    %cst_13 = arith.constant dense<0xFF800000> : vector<16xf32>
    %18 = vector.multi_reduction <maximumf>, %16, %cst_13 [1] : vector<16x128xf32> to vector<16xf32>
    %19 = vector.shape_cast %18 : vector<16xf32> to vector<16x1xf32>
    %20 = vector.broadcast %0 : f32 to vector<16x1xf32>
    %21 = arith.cmpf ogt, %19, %20 : vector<16x1xf32>
    %22 = arith.extui %21 : vector<16x1xi1> to vector<16x1xi32>
    %23 = arith.sitofp %22 : vector<16x1xi32> to vector<16x1xf32>
    %24 = vector.broadcast %23 : vector<16x1xf32> to vector<16x128xf32>
    %25 = arith.mulf %16, %24 : vector<16x128xf32>
    %cst_14 = arith.constant 1.000000e+00 : f32
    %26 = vector.broadcast %cst_14 : f32 to vector<16x1xf32>
    %27 = arith.subf %26, %23 : vector<16x1xf32>
    %28 = vector.broadcast %27 : vector<16x1xf32> to vector<16x128xf32>
    %29 = arith.mulf %17, %28 : vector<16x128xf32>
    %30 = arith.addf %25, %29 : vector<16x128xf32>
    %c0_15 = arith.constant 0 : index
    %c0_16 = arith.constant 0 : index
    %31 = vector.load %arg7[%c0_15, %c0_16] : memref<16x128xf32, #tpu.memory_space<vmem>>, vector<16x128xf32>
    tpu.vector_store %arg7[%c0_15, %c0_16], %30 {strides = array<i32>} : memref<16x128xf32, #tpu.memory_space<vmem>>, vector<16x128xf32>,
    return
  }
  func.func @transform_0(%arg0: i32) -> (i32, i32) {
    %c0_i32 = arith.constant 0 : i32
    %c0_i32_0 = arith.constant 0 : i32
    %c0_i32_1 = arith.constant 0 : i32
    return %c0_i32, %c0_i32_0 : i32, i32
  }
  func.func @transform_1(%arg0: i32) -> (i32, i32) {
    %c0_i32 = arith.constant 0 : i32
    %c0_i32_0 = arith.constant 0 : i32
    return %arg0, %c0_i32 : i32, i32
  }
  func.func @transform_2(%arg0: i32) -> (i32, i32) {
    %c0_i32 = arith.constant 0 : i32
    %c0_i32_0 = arith.constant 0 : i32
    %c0_i32_1 = arith.constant 0 : i32
    return %c0_i32, %c0_i32_0 : i32, i32
  }
  func.func @transform_3(%arg0: i32) -> (i32, i32) {
    %c0_i32 = arith.constant 0 : i32
    %c0_i32_0 = arith.constant 0 : i32
    %c0_i32_1 = arith.constant 0 : i32
    return %c0_i32, %c0_i32_0 : i32, i32
  }
  func.func @transform_4(%arg0: i32) -> (i32, i32) {
    %c0_i32 = arith.constant 0 : i32
    %c0_i32_0 = arith.constant 0 : i32
    %c0_i32_1 = arith.constant 0 : i32
    return %c0_i32, %c0_i32_0 : i32, i32
  }
  func.func @transform_5(%arg0: i32) -> (i32, i32) {
    %c0_i32 = arith.constant 0 : i32
    %c0_i32_0 = arith.constant 0 : i32
    %c0_i32_1 = arith.constant 0 : i32
    return %c0_i32, %c0_i32_0 : i32, i32
  }
  func.func @transform_6(%arg0: i32) -> (i32, i32) {
    %c0_i32 = arith.constant 0 : i32
    %c0_i32_0 = arith.constant 0 : i32
    return %arg0, %c0_i32 : i32, i32
  }
}

</mosaic_0001>

<bundles_post_ra>
// kernel: tpu_custom_call.1
= control target key start
LH: loop header
LB: loop body
LE: loop exit
PB: predicated region body
PF: predicated region fallthrough
CT: control target
= control target key end

     0   :  { %12 = vsyncpa [#allocation4], 0  ;;  %s709_s0 = inlined_call_operand.<no memory space> [shape: f32[1,1], index: 0, kind: input, shape index: {}]   ;;  %s710_s1 = inlined_call_operand.hbm [shape: f32[16,32], index: 1, kind: input, shape index: {}]   ;;  %s711_s2 = inlined_call_operand.hbm [shape: bf16[32,256], index: 2, kind: input, shape index: {}]   ;;  %s712_s3 = inlined_call_operand.vmem [shape: f32[1,256], index: 3, kind: input, shape index: {}]   ;;  %s713_s4 = inlined_call_operand.hbm [shape: bf16[256,256], index: 4, kind: input, shape index: {}]   ;;  %s714_s5 = inlined_call_operand.vmem [shape: f32[1,256], index: 5, kind: input, shape index: {}]   ;;  %s715_s6 = inlined_call_operand.hbm [shape: f32[16,128], index: 6, kind: output, shape index: {}]  }
   0x1   :  { %13 = vsyncpa [#allocation7], 0 }
   0x2   :  { %14 = vsyncpa [#allocation5], 0  ;;  %s633_s21 = smov [#allocation6]   ;;  %s634_s23 = smov [#allocation3]  }
   0x3   :  { %s34_s22 = sshll.u32 %s633_s21, 4  ;;  %s22_s24 = sshll.u32 %s634_s23, 4  ;;  %s35_s22 = int_to_ptr.vmem [resolvable:$true] %s34_s22  ;;  %s23_s24 = int_to_ptr.vmem [resolvable:$true] %s22_s24 }
   0x4   :  { %s555_s25 = scalar_lea.vmem %s35_s22, 512  ;;  %p560_p1 = scmp.lt.s32.totalorder %s35_s22, %s35_s22 }
   0x5   :  { %p556_p0 = scmp.ne.s32.totalorder %s35_s22, %s555_s25  ;;  %p561_p2 = scmp.lt.s32.totalorder %s555_s25, %s555_s25 }
   0x7   :  { %p562_p3 = por %p561_p2, %p560_p1 }
   0x9   :  { %p563_p4 = pnand %p562_p3, %p556_p0 }
   0xb   :  { %566 = shalt.err (!%p563_p4)
}
   0xc   :  { %s635_s26 = smov 128   ;;  %s636_s27 = smov 8  }
   0xd   :  { %40 = dma.hbm_to_vmem [thread:$0]  %s711_s2, 512, %s35_s22, [#allocation7], %s635_s26, %s635_s26, %s636_s27  }
   0xe   :  { %s575_s30 = scalar_lea.vmem %s23_s24, 256  ;;  %p580_p6 = scmp.lt.s32.totalorder %s23_s24, %s23_s24 }
   0xf   :  { %p576_p5 = scmp.ne.s32.totalorder %s23_s24, %s575_s30  ;;  %p581_p7 = scmp.lt.s32.totalorder %s575_s30, %s575_s30 }
  0x11   :  { %p582_p8 = por %p581_p7, %p580_p6 }
  0x13   :  { %p583_p9 = pnand %p582_p8, %p576_p5 }
  0x15   :  { %586 = shalt.err (!%p583_p9)
}
  0x16   :  { %28 = dma.hbm_to_vmem [thread:$0]  %s710_s1, 256, %s23_s24, [#allocation4], %s635_s26, %s635_s26, %s636_s27  }
  0x17   :  { %s637_s9 = smov [#allocation8]  }
  0x18   :  { %s48_s10 = sshll.u32 %s637_s9, 4  ;;  %s49_s10 = int_to_ptr.vmem [resolvable:$true] %s48_s10 }
  0x19   :  { %s595_s11 = scalar_lea.vmem %s49_s10, 4096  ;;  %p600_p11 = scmp.lt.s32.totalorder %s49_s10, %s49_s10 }
  0x1a   :  { %p596_p10 = scmp.ne.s32.totalorder %s49_s10, %s595_s11  ;;  %p601_p12 = scmp.lt.s32.totalorder %s595_s11, %s595_s11 }
  0x1c   :  { %p602_p13 = por %p601_p12, %p600_p11 }
  0x1e   :  { %p603_p0 = pnand %p602_p13, %p596_p10 }
  0x20   :  { %606 = shalt.err (!%p603_p0)
}
  0x21   :  { %54 = dma.hbm_to_vmem [thread:$0]  %s713_s4, 4096, %s49_s10, [#allocation7], %s635_s26, %s635_s26, %s636_s27  }
  0x22   :  { %627 = dma.done.wait [#allocation4], 256  }
  0x23   :  { %628 = vsyncadd [#allocation4], 4294967040 }
  0x24   :  { %629 = dma.done.wait [#allocation7], 4608  }
  0x25   :  { %630 = vsyncadd [#allocation7], 4294962688  ;;  %v638_v0 = vmov 0   ;;  %v493_v1 = vld [vmem:[#allocation6 + $0x14] ss:$8 sps:$4 sm:$0xff]   ;;  %vm107_vm0 = vcmask 261120   ;;  %v77_v40 = vlaneseq }
  0x26   :  { %143 = vmatprep.mubr.bf16.mxu0 %v638_v0  ;;  %v495_v2 = vld [vmem:[#allocation6 + $0x10] ss:$8 sps:$4 sm:$0xff]   ;;  %123 = vmatprep.subr.bf16.mxu0 %v493_v1  ;;  %v496_v3 = vld [vmem:[#allocation6 + $0x4] ss:$8 sps:$4 sm:$0xff]   ;;  %v498_v4 = vld [vmem:[#allocation6] ss:$8 sps:$4 sm:$0xff]  }
  0x27   :  { %v68_v5 = vld [vmem:[#allocation3] sm:$0xff]  ;;  %124 = vmatpush1.bf16.msra.mxu0 %v495_v2  ;;  %v69_v6 = vld [vmem:[#allocation3 + $0x8] sm:$0xff]  ;;  %v502_v9 = vld [vmem:[#allocation8 + $0x64] ss:$8 sps:$4 sm:$0xff]   ;;  %v78_v41 = vshrl.u32 %v77_v40, 7 }
  0x28   :  { %125 = vmatprep.subr.bf16.mxu0 %v496_v3  ;;  %v499_v7 = vld [vmem:[#allocation8 + $0x74] ss:$8 sps:$4 sm:$0xff]   ;;  %v501_v8 = vld [vmem:[#allocation8 + $0x70] ss:$8 sps:$4 sm:$0xff]   ;;  %v70_v10 = vpack.c.bf16 %v69_v6, %v68_v5  ;;  %v504_v11 = vld [vmem:[#allocation8 + $0x60] ss:$8 sps:$4 sm:$0xff]  }
  0x29   :  { %364 = vmatprep.subr.bf16.mxu1 %v499_v7  ;;  %v505_v12 = vld [vmem:[#allocation8 + $0x54] ss:$8 sps:$4 sm:$0xff]   ;;  %v507_v13 = vld [vmem:[#allocation8 + $0x50] ss:$8 sps:$4 sm:$0xff]   ;;  %v508_v14 = vld [vmem:[#allocation8 + $0x44] ss:$8 sps:$4 sm:$0xff]  }
  0x2a   :  { %365 = vmatpush1.bf16.msra.mxu1 %v501_v8  ;;  %v510_v15 = vld [vmem:[#allocation8 + $0x40] ss:$8 sps:$4 sm:$0xff]   ;;  %v511_v16 = vld [vmem:[#allocation8 + $0x34] ss:$8 sps:$4 sm:$0xff]   ;;  %v513_v17 = vld [vmem:[#allocation8 + $0x30] ss:$8 sps:$4 sm:$0xff]  }
  0x2b   :  { %126 = vmatpush1.bf16.msra.mxu0 %v498_v4  ;;  %366 = vmatprep.subr.bf16.mxu1 %v502_v9  ;;  %v514_v18 = vld [vmem:[#allocation8 + $0x24] ss:$8 sps:$4 sm:$0xff]   ;;  %v516_v19 = vld [vmem:[#allocation8 + $0x20] ss:$8 sps:$4 sm:$0xff]   ;;  %v517_v20 = vld [vmem:[#allocation8 + $0x14] ss:$8 sps:$4 sm:$0xff]   ;;  %v411_v4 = vstv %s709_s0 }
  0x2c   :  { %v519_v21 = vld [vmem:[#allocation8 + $0x10] ss:$8 sps:$4 sm:$0xff]   ;;  %v520_v22 = vld [vmem:[#allocation8 + $0x4] ss:$8 sps:$4 sm:$0xff]   ;;  %v522_v23 = vld [vmem:[#allocation8] ss:$8 sps:$4 sm:$0xff]  }
  0x2d   :  { %v523_v24 = vld [vmem:[#allocation8 + $0xf4] ss:$8 sps:$4 sm:$0xff]   ;;  %v525_v25 = vld [vmem:[#allocation8 + $0xf0] ss:$8 sps:$4 sm:$0xff]   ;;  %v526_v26 = vld [vmem:[#allocation8 + $0xe4] ss:$8 sps:$4 sm:$0xff]  }
  0x2e   :  { %450 = vmatmul.mubr.msk.bf16.vlgmr.msra.gmra.mxu0 %vm107_vm0, %v70_v10  ;;  %367 = vmatpush1.bf16.msra.mxu1 %v504_v11  ;;  %v528_v27 = vld [vmem:[#allocation8 + $0xe0] ss:$8 sps:$4 sm:$0xff]   ;;  %v529_v28 = vld [vmem:[#allocation8 + $0xd4] ss:$8 sps:$4 sm:$0xff]   ;;  %v531_v29 = vld [vmem:[#allocation8 + $0xd0] ss:$8 sps:$4 sm:$0xff]  }
  0x2f   :  { %368 = vmatprep.subr.bf16.mxu1 %v505_v12  ;;  %v532_v30 = vld [vmem:[#allocation8 + $0xc4] ss:$8 sps:$4 sm:$0xff]   ;;  %v534_v31 = vld [vmem:[#allocation8 + $0xc0] ss:$8 sps:$4 sm:$0xff]   ;;  %v535_v32 = vld [vmem:[#allocation8 + $0xb4] ss:$8 sps:$4 sm:$0xff]  }
  0x30   :  { %v537_v33 = vld [vmem:[#allocation8 + $0xb0] ss:$8 sps:$4 sm:$0xff]   ;;  %v538_v34 = vld [vmem:[#allocation8 + $0xa4] ss:$8 sps:$4 sm:$0xff]   ;;  %v540_v35 = vld [vmem:[#allocation8 + $0xa0] ss:$8 sps:$4 sm:$0xff]  }
  0x31   :  { %v541_v36 = vld [vmem:[#allocation8 + $0x94] ss:$8 sps:$4 sm:$0xff]   ;;  %v543_v37 = vld [vmem:[#allocation8 + $0x90] ss:$8 sps:$4 sm:$0xff]   ;;  %v544_v38 = vld [vmem:[#allocation8 + $0x84] ss:$8 sps:$4 sm:$0xff]  }
  0x32   :  { %369 = vmatpush1.bf16.msra.mxu1 %v507_v13  ;;  %v546_v39 = vld [vmem:[#allocation8 + $0x80] ss:$8 sps:$4 sm:$0xff]   ;;  %v83_v42 = vsub.s32 1, %v78_v41  ;;  %v79_v43 = vsub.s32 0, %v78_v41  ;;  %v75_v44 = vld [vmem:[%s712_s3] sm:$0x3] }
  0x33   :  { %370 = vmatprep.subr.bf16.mxu1 %v508_v14  ;;  %v192_v61 = vld [vmem:[%s714_s5] sm:$0x3]  ;;  %v639_v7 = vmov 0.0   ;;  %s640_s5 = smov [#allocation9]  }
  0x34   :  { %v84_v46 = vrot.slane %v75_v44, %v83_v42  ;;  %v80_v47 = vrot.slane %v75_v44, %v79_v43  ;;  %v197_v62 = vrot.slane %v192_v61, %v79_v43  ;;  %v201_v5 = vrot.slane %v192_v61, %v83_v42  ;;  %s433_s16 = sshll.u32 %s640_s5, 4  ;;  %s434_s16 = int_to_ptr.vmem [resolvable:$true] %s433_s16 }
  0x35   :  { %s607_s0 = scalar_lea.vmem %s434_s16, 256  ;;  %p612_p2 = scmp.lt.s32.totalorder %s434_s16, %s434_s16 }
  0x36   :  { %371 = vmatpush1.bf16.msra.mxu1 %v510_v15  ;;  %p608_p1 = scmp.ne.s32.totalorder %s434_s16, %s607_s0  ;;  %p613_p3 = scmp.lt.s32.totalorder %s607_s0, %s607_s0 }
  0x37   :  { %372 = vmatprep.subr.bf16.mxu1 %v511_v16 }
  0x38   :  { %p614_p4 = por %p613_p3, %p612_p2 }
  0x3a   :  { %373 = vmatpush1.bf16.msra.mxu1 %v513_v17  ;;  %p615_p5 = pnand %p614_p4, %p608_p1 }
  0x3b   :  { %374 = vmatprep.subr.bf16.mxu1 %v514_v18 }
  0x3e   :  { %375 = vmatpush1.bf16.msra.mxu1 %v516_v19 }
  0x3f   :  { %376 = vmatprep.subr.bf16.mxu1 %v517_v20 }
  0x42   :  { %377 = vmatpush1.bf16.msra.mxu1 %v519_v21 }
  0x43   :  { %378 = vmatprep.subr.bf16.mxu1 %v520_v22 }
  0x46   :  { %379 = vmatpush1.bf16.msra.mxu1 %v522_v23 }
  0x47   :  { %380 = vmatprep.subr.bf16.mxu1 %v523_v24 }
  0x4a   :  { %381 = vmatpush2.bf16.msra.mxu1 %v525_v25 }
  0x4b   :  { %382 = vmatprep.subr.bf16.mxu1 %v526_v26 }
  0x4e   :  { %383 = vmatpush2.bf16.msra.mxu1 %v528_v27 }
  0x4f   :  { %384 = vmatprep.subr.bf16.mxu1 %v529_v28 }
  0x52   :  { %385 = vmatpush2.bf16.msra.mxu1 %v531_v29 }
  0x53   :  { %386 = vmatprep.subr.bf16.mxu1 %v532_v30 }
  0x56   :  { %387 = vmatpush2.bf16.msra.mxu1 %v534_v31 }
  0x57   :  { %388 = vmatprep.subr.bf16.mxu1 %v535_v32 }
  0x5a   :  { %389 = vmatpush2.bf16.msra.mxu1 %v537_v33 }
  0x5b   :  { %390 = vmatprep.subr.bf16.mxu1 %v538_v34 }
  0x5e   :  { %391 = vmatpush2.bf16.msra.mxu1 %v540_v35 }
  0x5f   :  { %392 = vmatprep.subr.bf16.mxu1 %v541_v36 }
  0x62   :  { %393 = vmatpush2.bf16.msra.mxu1 %v543_v37 }
  0x63   :  { %394 = vmatprep.subr.bf16.mxu1 %v544_v38 }
  0x66   :  { %395 = vmatpush2.bf16.msra.mxu1 %v546_v39 }
  0xee   :  { %v145_v45 = vpop.f32.mrf.mxu0 }
  0xef   :  { %v146_v52 = vadd.f32 %v145_v45, %v80_v47 }
  0xf0   :  { %v147_v48 = vpop.f32.mrf.mxu0 }
  0xf1   :  { %v148_v50 = vadd.f32 %v147_v48, %v84_v46  ;;  %v154_v58 = vmax.f32 %v146_v52, 0.0 }
  0xf2   :  { %v149_v49 = vpop.f32.mrf.mxu0 }
  0xf3   :  { %v150_v51 = vadd.f32 %v149_v49, %v80_v47  ;;  %v155_v56 = vmax.f32 %v148_v50, 0.0 }
  0xf4   :  { %v151_v53 = vpop.f32.mrf.mxu0 }
  0xf5   :  { %v152_v54 = vadd.f32 %v151_v53, %v84_v46  ;;  %v156_v55 = vmax.f32 %v150_v51, 0.0 }
  0xf7   :  { %v157_v57 = vmax.f32 %v152_v54, 0.0  ;;  %v158_v60 = vpack.c.bf16 %v156_v55, %v154_v58 }
  0xf9   :  { %v159_v59 = vpack.c.bf16 %v157_v57, %v155_v56 }
  0xfb   :  { %396 = vmatprep.mubr.bf16.mxu1 %v159_v59 }
  0xfc   :  { %397 = vmatmul.mubr.bf16.vlgmr.msra.gmra.mxu1 %v158_v60 }
 0x1bc   :  { %v398_v63 = vpop.f32.mrf.mxu1 }
 0x1bd   :  { %v399_v0 = vadd.f32 %v398_v63, %v197_v62 }
 0x1be   :  { %v400_v1 = vpop.f32.mrf.mxu1 }
 0x1bf   :  { %407 = vmax.xlane.f32.xlu0 %v399_v0  ;;  %v401_v9 = vadd.f32 %v400_v1, %v201_v5 }
 0x1c0   :  { %v402_v2 = vpop.f32.mrf.mxu1 }
 0x1c1   :  { %v403_v3 = vadd.f32 %v402_v2, %v197_v62 }
 0x1c2   :  { %v404_v11 = vpop.f32.mrf.mxu1 }
 0x1c3   :  { %409 = vmax.xlane.f32.xlu0 %v403_v3  ;;  %v405_v16 = vadd.f32 %v404_v11, %v201_v5 }
 0x248   :  { %v408_v6 = vpop.xlane.xlu0 %407 }
 0x249   :  { %vm412_vm1 = vcmp.gt.f32.partialorder %v408_v6, %v411_v4 }
 0x24a   :  { %v483_v8 = vsel %vm412_vm1, 1.0, %v639_v7 }
 0x24b   :  { %v420_v10 = vsub.f32 1.0, %v483_v8  ;;  %v418_v13 = vmul.f32 %v483_v8, %v399_v0 }
 0x24c   :  { %v410_v12 = vpop.xlane.xlu0 %409 }
 0x24d   :  { %v422_v14 = vmul.f32 %v420_v10, %v401_v9  ;;  %vm413_vm2 = vcmp.gt.f32.partialorder %v410_v12, %v411_v4 }
 0x24e   :  { %v484_v15 = vsel %vm413_vm2, 1.0, %v639_v7 }
 0x24f   :  { %v424_v17 = vadd.f32 %v422_v14, %v418_v13  ;;  %v421_v18 = vsub.f32 1.0, %v484_v15  ;;  %v419_v19 = vmul.f32 %v484_v15, %v403_v3 }
 0x251   :  { %426 = vst [vmem:[#allocation9] sm:$0xff] %v424_v17  ;;  %v423_v20 = vmul.f32 %v421_v18, %v405_v16 }
 0x253   :  { %v425_v21 = vadd.f32 %v423_v20, %v419_v19 }
 0x255   :  { %427 = vst [vmem:[#allocation9 + $0x8] sm:$0xff] %v425_v21 }
 0x256   :  { %618 = shalt.err (!%p615_p5)
}
 0x257   :  { %439 = dma.vmem_to_hbm [thread:$0]  %s434_s16, 256, %s715_s6, [#allocation5], %s635_s26, %s635_s26, %s636_s27  }
 0x258   :  { %631 = dma.done.wait [#allocation5], 256  }
 0x259   :  { %632 = vsyncadd [#allocation5], 4294967040 }
 0x25a   :  { %443 = vsyncpa [#allocation4], 1 }
 0x25b   :  { %444 = vsyncpa [#allocation7], 1 }
 0x25c   :  { %445 = vsyncpa [#allocation5], 1 }

</bundles_post_ra>
